<compile_context>
chip_gen: v5e
topology: v5e:2x2
jax: 0.10.0
libtpu: 0.0.40
codegen_flags: <defaults>
</compile_context>

<pallas_src>
import jax
import jax.numpy as jnp
from jax.experimental import pallas as pl
from jax.experimental.pallas import tpu as pltpu

_EPS = 1e-12  # torch.nn.functional.normalize default eps


def _round_up(x, m):
    return ((x + m - 1) // m) * m


# --------------------------------------------------------------------------
# 1. Row L2 normalization:  F.normalize(x, dim=1)
# --------------------------------------------------------------------------
def _row_normalize_kernel(x_ref, o_ref):
    x = x_ref[...].astype(jnp.float32)
    sumsq = jnp.sum(x * x, axis=-1, keepdims=True)
    # 1 / max(||x||, eps) == rsqrt(max(sumsq, eps^2)); rsqrt runs on the EUP.
    inv = jax.lax.rsqrt(jnp.maximum(sumsq, _EPS * _EPS))
    o_ref[...] = (x * inv).astype(o_ref.dtype)


def row_normalize(x, *, tn=512):
    """x: (N, D) -> x / max(||x||_2 row-wise, eps), matching F.normalize(dim=1)."""
    N, D = x.shape
    tn = max(8, min(_round_up(tn, 8), _round_up(N, 8)))
    n_pad = _round_up(N, tn)
    xp = x if n_pad == N else jnp.pad(x, ((0, n_pad - N), (0, 0)))

    out = pl.pallas_call(
        _row_normalize_kernel,
        out_shape=jax.ShapeDtypeStruct((n_pad, D), x.dtype),
        grid_spec=pltpu.PrefetchScalarGridSpec(
            num_scalar_prefetch=0,
            grid=(n_pad // tn,),
            in_specs=[pl.BlockSpec((tn, D), lambda i: (i, 0))],
            out_specs=pl.BlockSpec((tn, D), lambda i: (i, 0)),
        ),
        compiler_params=pltpu.CompilerParams(
            dimension_semantics=("parallel",),
        ),
    )(xp)
    return out[:N] if n_pad != N else out


# --------------------------------------------------------------------------
# 2. Gather masked positions:  out[b] = outputs[b, mask_pos[b], :]
#    (scalar-prefetched positions, manual DMA from HBM)
# --------------------------------------------------------------------------
def _gather_rows_kernel(pos_ref, x_hbm, o_ref, buf, sem):
    b = pl.program_id(0)
    p = pos_ref[b]
    cp = pltpu.make_async_copy(x_hbm.at[b, pl.ds(p, 1)], buf, sem)
    cp.start()
    cp.wait()
    o_ref[0] = buf[...]


def gather_masked_positions(outputs, mask_pos):
    """outputs: (B, S, H), mask_pos: (B,) int -> (B, H)."""
    B, S, H = outputs.shape
    out = pl.pallas_call(
        _gather_rows_kernel,
        out_shape=jax.ShapeDtypeStruct((B, 1, H), outputs.dtype),
        grid_spec=pltpu.PrefetchScalarGridSpec(
            num_scalar_prefetch=1,
            grid=(B,),
            in_specs=[pl.BlockSpec(memory_space=pl.ANY)],
            out_specs=pl.BlockSpec((1, 1, H), lambda b, pos: (b, 0, 0)),
            scratch_shapes=[
                pltpu.VMEM((1, H), outputs.dtype),
                pltpu.SemaphoreType.DMA,
            ],
        ),
        compiler_params=pltpu.CompilerParams(
            dimension_semantics=("arbitrary",),
        ),
    )(mask_pos.astype(jnp.int32), outputs)
    return out.reshape(B, H)


# --------------------------------------------------------------------------
# 3/4. Shared tiled matmul with a (1, K) epilogue vector (scale or bias)
# --------------------------------------------------------------------------
def _make_matmul_kernel(use_bf16, extra_kind):
    def kernel(q_ref, w_ref, e_ref, o_ref):
        q = q_ref[...]
        w = w_ref[...]
        if use_bf16:
            q = q.astype(jnp.bfloat16)
            w = w.astype(jnp.bfloat16)
        acc = jnp.dot(q, w, preferred_element_type=jnp.float32)
        if extra_kind == "scale":
            acc = acc * e_ref[...]
        else:  # "bias"
            acc = acc + e_ref[...]
        o_ref[...] = acc.astype(o_ref.dtype)
    return kernel


def _tiled_matmul(x, w, extra, extra_kind, *, tn=256, tk=512, use_bf16=False,
                  out_dtype=None):
    """out = (x @ w) * extra  (extra_kind='scale')  or  (x @ w) + extra ('bias').

    x: (N, C), w: (C, K), extra: (K,) or (1, K)."""
    N, C = x.shape
    C2, K = w.shape
    assert C == C2
    out_dtype = out_dtype or x.dtype

    tn = max(8, min(_round_up(tn, 8), _round_up(N, 8)))
    tk = max(128, min(_round_up(tk, 128), _round_up(K, 128)))
    n_pad = _round_up(N, tn)
    k_pad = _round_up(K, tk)

    xp = x if n_pad == N else jnp.pad(x, ((0, n_pad - N), (0, 0)))
    wp = w if k_pad == K else jnp.pad(w, ((0, 0), (0, k_pad - K)))
    ep = jnp.reshape(extra.astype(jnp.float32), (1, K))
    if k_pad != K:
        ep = jnp.pad(ep, ((0, 0), (0, k_pad - K)))

    gn = n_pad // tn
    gk = k_pad // tk

    # Leading grid axis = the one with more blocks (megacore balance on v7x);
    # the operand indexed only by the leading axis is read from HBM once.
    if gk >= gn:
        grid = (gk, gn)
        x_map = lambda j, i: (i, 0)
        w_map = lambda j, i: (0, j)
        e_map = lambda j, i: (0, j)
        o_map = lambda j, i: (i, j)
    else:
        grid = (gn, gk)
        x_map = lambda i, j: (i, 0)
        w_map = lambda i, j: (0, j)
        e_map = lambda i, j: (0, j)
        o_map = lambda i, j: (i, j)

    itemsize = 4
    vmem_need = 2 * itemsize * (tn * C + C * tk + tn * tk + tk) + (2 << 20)
    vmem_limit = int(min(max(vmem_need, 32 << 20), 64 << 20))  # v7x-safe

    cost = pl.CostEstimate(
        flops=2 * n_pad * C * k_pad,
        transcendentals=0,
        bytes_accessed=itemsize * (n_pad * C + C * k_pad + n_pad * k_pad + k_pad),
    )

    out = pl.pallas_call(
        _make_matmul_kernel(use_bf16, extra_kind),
        out_shape=jax.ShapeDtypeStruct((n_pad, k_pad), out_dtype),
        grid_spec=pltpu.PrefetchScalarGridSpec(
            num_scalar_prefetch=0,
            grid=grid,
            in_specs=[
                pl.BlockSpec((tn, C), x_map),
                pl.BlockSpec((C, tk), w_map),
                pl.BlockSpec((1, tk), e_map),
            ],
            out_specs=pl.BlockSpec((tn, tk), o_map),
        ),
        compiler_params=pltpu.CompilerParams(
            dimension_semantics=("parallel", "parallel"),
            vmem_limit_bytes=vmem_limit,
        ),
        cost_estimate=cost,
    )(xp, wp, ep)

    if n_pad != N or k_pad != K:
        out = out[:N, :K]
    return out


# --------------------------------------------------------------------------
# 3. mask_fc:  nn.Linear(hidden_dim, vocab_size)
# --------------------------------------------------------------------------
def linear_forward(x, weight, bias, *, tn=256, tk=512, use_bf16_matmul=False):
    """x: (N, in), weight: (out, in), bias: (out,) -> x @ weight.T + bias."""
    return _tiled_matmul(x, weight.T, bias, "bias",
                         tn=tn, tk=tk, use_bf16=use_bf16_matmul)


# --------------------------------------------------------------------------
# 4. Memory_Bank.forward:  logit = q @ F.normalize(W, dim=0)
# --------------------------------------------------------------------------
def _col_inv_norm_kernel(w_ref, inv_ref):
    w = w_ref[...].astype(jnp.float32)
    sumsq = jnp.sum(w * w, axis=0, keepdims=True)
    inv_ref[...] = jax.lax.rsqrt(jnp.maximum(sumsq, _EPS * _EPS))


def memory_bank_forward(q, W, *, tn=256, tk=512, use_bf16_matmul=False):
    """q: (N, C), W: (C, K) -> torch.einsum('nc,ck->nk', q, F.normalize(W, 0))."""
    N, C = q.shape
    C2, K = W.shape
    assert C == C2

    # ---- pass 1: per-column inverse norm of W (computed exactly once) ----
    tk_norm = max(128, min(512, _round_up(K, 128)))
    k_pad = _round_up(K, tk_norm)
    wp = W if k_pad == K else jnp.pad(W, ((0, 0), (0, k_pad - K)))
    inv = pl.pallas_call(
        _col_inv_norm_kernel,
        out_shape=jax.ShapeDtypeStruct((1, k_pad), jnp.float32),
        grid_spec=pltpu.PrefetchScalarGridSpec(
            num_scalar_prefetch=0,
            grid=(k_pad // tk_norm,),
            in_specs=[pl.BlockSpec((C, tk_norm), lambda j: (0, j))],
            out_specs=pl.BlockSpec((1, tk_norm), lambda j: (0, j)),
        ),
        compiler_params=pltpu.CompilerParams(
            dimension_semantics=("parallel",),
        ),
    )(wp)[0, :K]

    # ---- pass 2: logits = (q @ W) * inv_norm, tiled over (N, K) ----
    return _tiled_matmul(q, W, inv, "scale",
                         tn=tn, tk=tk, use_bf16=use_bf16_matmul)


# --------------------------------------------------------------------------
# EvtRepLrn.forward (Pallas-translatable portion)
# --------------------------------------------------------------------------
def evtreplrn_forward(enc_q_out, enc_k_out, enc_p1_out, enc_p2_out, enc_p3_out,
                      mask_pos, mask_w, mask_b):
    """enc_*_out: (B, S, H) BERT-encoder outputs (stand-ins for encoder_q)."""
    B = enc_k_out.shape[0]
    # event_embedding = outputs[:, 0, :], then F.normalize(dim=1).
    stacked = jnp.concatenate(
        [enc_k_out[:, 0, :], enc_p1_out[:, 0, :],
         enc_p2_out[:, 0, :], enc_p3_out[:, 0, :]], axis=0)
    normed = row_normalize(stacked)
    q, k1, k2, k3 = (normed[:B], normed[B:2 * B],
                     normed[2 * B:3 * B], normed[3 * B:])
    # mlm_logits = mask_fc(m_outputs[b, mask_pos[b], :])
    gathered = gather_masked_positions(enc_q_out, mask_pos)
    mlm_logits = linear_forward(gathered, mask_w, mask_b)
    return q, k1, k2, k3, mlm_logits


# --------------------------------------------------------------------------
# References (pure JAX)
# --------------------------------------------------------------------------
def _row_normalize_ref(x):
    n = jnp.sqrt(jnp.sum(x * x, axis=1, keepdims=True))
    return x / jnp.maximum(n, _EPS)


def memory_bank_reference(q, W):
    col_norm = jnp.sqrt(jnp.sum(W * W, axis=0, keepdims=True))
    return q @ (W / jnp.maximum(col_norm, _EPS))


if __name__ == "__main__":
    key = jax.random.PRNGKey(0)
    keys = jax.random.split(key, 10)

    # Small shapes consistent with the module: batch, seq, hidden, vocab, bank.
    B, S, H, V, bank = 2, 8, 32, 128, 64

    enc_q_out = jax.random.normal(keys[0], (B, S, H), jnp.float32)
    enc_k_out = jax.random.normal(keys[1], (B, S, H), jnp.float32)
    enc_p1_out = jax.random.normal(keys[2], (B, S, H), jnp.float32)
    enc_p2_out = jax.random.normal(keys[3], (B, S, H), jnp.float32)
    enc_p3_out = jax.random.normal(keys[4], (B, S, H), jnp.float32)
    mask_pos = jnp.array([3, 5], dtype=jnp.int32)
    mask_w = jax.random.normal(keys[5], (V, H), jnp.float32) * 0.05
    mask_b = jax.random.normal(keys[6], (V,), jnp.float32) * 0.05

    q, k1, k2, k3, mlm = jax.block_until_ready(
        evtreplrn_forward(enc_q_out, enc_k_out, enc_p1_out, enc_p2_out,
                          enc_p3_out, mask_pos, mask_w, mask_b))

    assert q.shape == (B, H) and mlm.shape == (B, V)
    assert jnp.allclose(q, _row_normalize_ref(enc_k_out[:, 0, :]), atol=1e-5, rtol=1e-5)
    assert jnp.allclose(k1, _row_normalize_ref(enc_p1_out[:, 0, :]), atol=1e-5, rtol=1e-5)
    assert jnp.allclose(k2, _row_normalize_ref(enc_p2_out[:, 0, :]), atol=1e-5, rtol=1e-5)
    assert jnp.allclose(k3, _row_normalize_ref(enc_p3_out[:, 0, :]), atol=1e-5, rtol=1e-5)
    gath_ref = enc_q_out[jnp.arange(B), mask_pos, :]
    mlm_ref = gath_ref @ mask_w.T + mask_b
    assert jnp.allclose(mlm, mlm_ref, atol=1e-4, rtol=1e-4), "mismatch vs reference (mlm)"

    # Memory_Bank component (small shape).
    qb = jax.random.normal(keys[7], (B, H), jnp.float32)
    Wb = jax.random.normal(keys[8], (H, bank), jnp.float32)
    outb = jax.block_until_ready(memory_bank_forward(qb, Wb))
    assert outb.shape == (B, bank)
    assert jnp.allclose(outb, memory_bank_reference(qb, Wb), atol=1e-4, rtol=1e-4)

    # Memory_Bank padded / multi-tile path (N, K not multiples of the tiles).
    q2 = jax.random.normal(keys[9], (300, 64), jnp.float32)
    W2 = jax.random.normal(keys[0], (64, 1000), jnp.float32)
    out2 = jax.block_until_ready(memory_bank_forward(q2, W2))
    ref2 = memory_bank_reference(q2, W2)
    assert out2.shape == (300, 1000)
    assert jnp.allclose(out2, ref2, atol=1e-4, rtol=1e-4), "mismatch vs reference (tiled)"

    # bf16-operand MXU fast path (v6e/v7x); accumulation and scaling stay f32.
    out_bf16 = jax.block_until_ready(memory_bank_forward(q2, W2, use_bf16_matmul=True))
    assert jnp.allclose(out_bf16, ref2, atol=1e-1, rtol=1e-1), "mismatch vs reference (bf16)"

    print("KERNEL_OK")
</pallas_src>

<mosaic_0001>
module attributes {stable_mosaic.version = 11 : i64} {
  func.func @_row_normalize_kernel(%arg0: i32, %arg1: memref<8x32xf32, #tpu.memory_space<vmem>>, %arg2: memref<8x32xf32, #tpu.memory_space<vmem>>) attributes {dimension_semantics = [#tpu.dimension_semantics<parallel>], iteration_bounds = array<i64: 1>, scalar_prefetch = 0 : i64, scratch_operands = 0 : i64, tpu.core_type = #tpu.core_type<tc>, window_params = [{transform_indices = @transform_0, window_bounds = array<i64: 8, 32>}, {transform_indices = @transform_1, window_bounds = array<i64: 8, 32>}]} {
    %c0 = arith.constant 0 : index
    %c0_0 = arith.constant 0 : index
    %0 = vector.load %arg1[%c0, %c0_0] : memref<8x32xf32, #tpu.memory_space<vmem>>, vector<8x32xf32>
    %1 = arith.mulf %0, %0 : vector<8x32xf32>
    %cst = arith.constant dense<0.000000e+00> : vector<8xf32>
    %2 = vector.multi_reduction <add>, %1, %cst [1] : vector<8x32xf32> to vector<8xf32>
    %3 = vector.shape_cast %2 : vector<8xf32> to vector<8x1xf32>
    %cst_1 = arith.constant 1.000000e-24 : f32
    %4 = vector.broadcast %cst_1 : f32 to vector<8x1xf32>
    %5 = arith.maximumf %3, %4 : vector<8x1xf32>
    %6 = math.rsqrt %5 : vector<8x1xf32>
    %7 = vector.broadcast %6 : vector<8x1xf32> to vector<8x32xf32>
    %8 = arith.mulf %0, %7 : vector<8x32xf32>
    %c0_2 = arith.constant 0 : index
    %c0_3 = arith.constant 0 : index
    %9 = vector.load %arg2[%c0_2, %c0_3] : memref<8x32xf32, #tpu.memory_space<vmem>>, vector<8x32xf32>
    tpu.vector_store %arg2[%c0_2, %c0_3], %8 {strides = array<i32>} : memref<8x32xf32, #tpu.memory_space<vmem>>, vector<8x32xf32>,
    return
  }
  func.func @transform_0(%arg0: i32) -> (i32, i32) {
    %c0_i32 = arith.constant 0 : i32
    %c0_i32_0 = arith.constant 0 : i32
    return %arg0, %c0_i32 : i32, i32
  }
  func.func @transform_1(%arg0: i32) -> (i32, i32) {
    %c0_i32 = arith.constant 0 : i32
    %c0_i32_0 = arith.constant 0 : i32
    return %arg0, %c0_i32 : i32, i32
  }
}

</mosaic_0001>

<bundles_post_ra>
// kernel: tpu_custom_call.1
= control target key start
LH: loop header
LB: loop body
LE: loop exit
PB: predicated region body
PF: predicated region fallthrough
CT: control target
= control target key end

     0   :  { %6 = vsyncpa [#allocation3], 0  ;;  %s135_s0 = inlined_call_operand.hbm [shape: f32[8,32], index: 0, kind: input, shape index: {}]   ;;  %s136_s1 = inlined_call_operand.hbm [shape: f32[8,32], index: 1, kind: output, shape index: {}]  }
   0x1   :  { %7 = vsyncpa [#allocation4], 0  ;;  %s13_s8 = sshll.u32 %s135_s0, 4  ;;  %s115_s9 = smov [#allocation2]   ;;  %s14_s8 = int_to_ptr.hbm [resolvable:$true] %s13_s8 }
   0x2   :  { %s15_s10 = sshll.u32 %s115_s9, 4  ;;  %s16_s10 = int_to_ptr.vmem [resolvable:$true] %s15_s10 }
   0x3   :  { %18 = dma.hbm_to_vmem [thread:$0]  %s14_s8, 128, %s16_s10, [#allocation3]  }
   0x4   :  { %111 = dma.done.wait [#allocation3], 128  }
   0x5   :  { %112 = vsyncadd [#allocation3], 4294967168  ;;  %v23_v0 = vld [vmem:[#allocation2] sm:$0xff]  ;;  %vm25_vm0 = vcmask 261120   ;;  %s116_s0 = smov [#allocation5]   ;;  %s49_s14 = sshll.u32 %s136_s1, 4  ;;  %s50_s14 = int_to_ptr.hbm [resolvable:$true] %s49_s14 }
   0x6   :  { %v24_v1 = vmul.f32 %v23_v0, %v23_v0  ;;  %s47_s11 = sshll.u32 %s116_s0, 4  ;;  %s48_s11 = int_to_ptr.vmem [resolvable:$true] %s47_s11 }
   0x8   :  { %v26_v2 = vsel %vm25_vm0, %v24_v1, 0.0 }
   0x9   :  { %27 = vadd.xlane.f32.xlu0 %v26_v2 }
  0x7c   :  { %v28_v3 = vpop.xlane.xlu0 %27 }
  0x7d   :  { %v29_v4 = vmax.f32 %v28_v3, 1e-24 }
  0x7f   :  { %61 = vrsqrt.f32 %v29_v4  ;;  %vm36_vm2 = vweird.f32 %v29_v4 }
  0x85   :  { %v62_v5 = vpop.eup %61 }
  0x86   :  { %v31_v6 = vmul.f32 %v62_v5, %v29_v4  ;;  %vm37_vm1 = vweird.f32 %v62_v5 }
  0x87   :  { %vm38_vm3 = vmor %vm36_vm2, %vm37_vm1 }
  0x88   :  { %v32_v7 = vmul.f32 %v62_v5, %v31_v6 }
  0x8a   :  { %v33_v8 = vmul.f32 0.5, %v32_v7 }
  0x8c   :  { %v34_v9 = vsub.f32 1.5, %v33_v8 }
  0x8e   :  { %v35_v10 = vmul.f32 %v62_v5, %v34_v9 }
  0x90   :  { %v39_v11 = vsel %vm38_vm3, %v62_v5, %v35_v10 }
  0x91   :  { %v40_v12 = vmul.f32 %v39_v11, %v23_v0 }
  0x93   :  { %41 = vst.msk [vmem:[#allocation5] sm:$0xff] %vm25_vm0, %v40_v12 }
  0x94   :  { %52 = dma.vmem_to_hbm [thread:$0]  %s48_s11, 128, %s50_s14, [#allocation4]  }
  0x95   :  { %113 = dma.done.wait [#allocation4], 128  }
  0x96   :  { %114 = vsyncadd [#allocation4], 4294967168 }
  0x97   :  { %57 = vsyncpa [#allocation3], 1 }
  0x98   :  { %58 = vsyncpa [#allocation4], 1 }

</bundles_post_ra>
